<compile_context>
chip_gen: v7x
topology: tpu7x:2x2x1
jax: 0.10.0
libtpu: 0.0.40
codegen_flags: <defaults>
</compile_context>

<pallas_src>
import jax
import jax.numpy as jnp
from jax.experimental import pallas as pl
from jax.experimental.pallas import tpu as pltpu


def _affine_kernel(a_ref, b_ref, x_ref, o_ref):
    # a_ref / b_ref live in SMEM with shape (1,), matching the PyTorch
    # Parameters `self.a` / `self.b` (scalar broadcast).
    a0 = a_ref[0]
    b0 = b_ref[0]
    o_ref[...] = x_ref[...] * a0 + b0


def _round_up(n, m):
    return ((n + m - 1) // m) * m


def dummy_model_forward(x, a, b):
    """y = x * a + b.

    x: any float32 array (PyTorch passes e.g. NCHW). a, b: shape (1,) float32.
    """
    orig_shape = x.shape
    total = x.size

    # ---- choose a lane-dense 2D slab layout -------------------------------
    # Wide last dim (multiple of 128, capped at 2048) => unmasked full-vreg
    # stores; row count padded to a multiple of the row-tile.
    lane = min(2048, _round_up(total, 128))            # >= 128, multiple of 128
    rows = pl.cdiv(total, lane)

    # Row tile: multiple of 8, capped so a block is <= 256 x 2048 f32 = 2 MiB.
    tile_rows = min(256, _round_up(rows, 8))
    rows_padded = _round_up(rows, tile_rows)
    padded_total = rows_padded * lane

    flat = x.reshape(-1)
    if padded_total != total:
        flat = jnp.pad(flat, (0, padded_total - total))
    x2d = flat.reshape(rows_padded, lane)

    grid = (rows_padded // tile_rows,)

    # Pipeline footprint: (x tile + out tile) * 2 buffers * block bytes.
    # Worst case 4 * 2 MiB = 8 MiB; 32 MiB scoped limit is safe on v5e/v6e/v7x.
    out2d = pl.pallas_call(
        _affine_kernel,
        out_shape=jax.ShapeDtypeStruct((rows_padded, lane), x.dtype),
        grid_spec=pltpu.PrefetchScalarGridSpec(
            num_scalar_prefetch=0,
            grid=grid,
            in_specs=[
                pl.BlockSpec(memory_space=pltpu.SMEM),               # a (1,)
                pl.BlockSpec(memory_space=pltpu.SMEM),               # b (1,)
                pl.BlockSpec((tile_rows, lane), lambda i: (i, 0)),   # x tile
            ],
            out_specs=pl.BlockSpec((tile_rows, lane), lambda i: (i, 0)),
        ),
        compiler_params=pltpu.CompilerParams(
            dimension_semantics=("parallel",),
            vmem_limit_bytes=32 << 20,
        ),
    )(a, b, x2d)

    return out2d.reshape(-1)[:total].reshape(orig_shape)


if __name__ == "__main__":
    key = jax.random.PRNGKey(0)
    k_x, k_a, k_b = jax.random.split(key, 3)

    # Small NCHW-style input consistent with the module's elementwise forward.
    x = jax.random.normal(k_x, (2, 4, 16, 16), dtype=jnp.float32)

    # Parameters: nn.Parameter(torch.randn(1)) -> deterministic normal draws.
    a = jax.random.normal(k_a, (1,), dtype=jnp.float32)
    b = jax.random.normal(k_b, (1,), dtype=jnp.float32)

    y = dummy_model_forward(x, a, b)
    jax.block_until_ready(y)

    # Reference check against plain JAX semantics of x * a + b (scalar broadcast).
    ref = x * a + b
    assert y.shape == x.shape and y.dtype == x.dtype
    assert jnp.allclose(y, ref, atol=1e-6, rtol=1e-6)

    print("KERNEL_OK")
</pallas_src>

<mosaic_0001>
module attributes {stable_mosaic.version = 11 : i64} {
  func.func @_affine_kernel(%arg0: i32, %arg1: memref<1xf32, #tpu.memory_space<smem>>, %arg2: memref<1xf32, #tpu.memory_space<smem>>, %arg3: memref<8x2048xf32, #tpu.memory_space<vmem>>, %arg4: memref<8x2048xf32, #tpu.memory_space<vmem>>) attributes {dimension_semantics = [#tpu.dimension_semantics<parallel>], iteration_bounds = array<i64: 1>, scalar_prefetch = 0 : i64, scratch_operands = 0 : i64, tpu.core_type = #tpu.core_type<tc>, window_params = [{transform_indices = @transform_0, window_bounds = array<i64: 1>}, {transform_indices = @transform_1, window_bounds = array<i64: 1>}, {transform_indices = @transform_2, window_bounds = array<i64: 8, 2048>}, {transform_indices = @transform_3, window_bounds = array<i64: 8, 2048>}]} {
    %c0 = arith.constant 0 : index
    %0 = memref.load %arg1[%c0] : memref<1xf32, #tpu.memory_space<smem>>
    %c0_0 = arith.constant 0 : index
    %1 = memref.load %arg2[%c0_0] : memref<1xf32, #tpu.memory_space<smem>>
    %c0_1 = arith.constant 0 : index
    %c0_2 = arith.constant 0 : index
    %2 = vector.load %arg3[%c0_1, %c0_2] : memref<8x2048xf32, #tpu.memory_space<vmem>>, vector<8x2048xf32>
    %3 = vector.broadcast %0 : f32 to vector<8x2048xf32>
    %4 = arith.mulf %2, %3 : vector<8x2048xf32>
    %5 = vector.broadcast %1 : f32 to vector<8x2048xf32>
    %6 = arith.addf %4, %5 : vector<8x2048xf32>
    %c0_3 = arith.constant 0 : index
    %c0_4 = arith.constant 0 : index
    %7 = vector.load %arg4[%c0_3, %c0_4] : memref<8x2048xf32, #tpu.memory_space<vmem>>, vector<8x2048xf32>
    tpu.vector_store %arg4[%c0_3, %c0_4], %6 {strides = array<i32>} : memref<8x2048xf32, #tpu.memory_space<vmem>>, vector<8x2048xf32>,
    return
  }
  func.func @transform_0(%arg0: i32) -> i32 {
    %c0_i32 = arith.constant 0 : i32
    %c0_i32_0 = arith.constant 0 : i32
    return %c0_i32 : i32
  }
  func.func @transform_1(%arg0: i32) -> i32 {
    %c0_i32 = arith.constant 0 : i32
    %c0_i32_0 = arith.constant 0 : i32
    return %c0_i32 : i32
  }
  func.func @transform_2(%arg0: i32) -> (i32, i32) {
    %c0_i32 = arith.constant 0 : i32
    %c0_i32_0 = arith.constant 0 : i32
    return %arg0, %c0_i32 : i32, i32
  }
  func.func @transform_3(%arg0: i32) -> (i32, i32) {
    %c0_i32 = arith.constant 0 : i32
    %c0_i32_0 = arith.constant 0 : i32
    return %arg0, %c0_i32 : i32, i32
  }
}

</mosaic_0001>

<bundles_post_ra>
// kernel: tpu_custom_call.1
= control target key start
LH: loop header
LB: loop body
LE: loop exit
PB: predicated region body
PF: predicated region fallthrough
CT: control target
= control target key end

     0   :  { %10 = vsyncpa [#allocation5], 0  ;;  %s232_s0 = inlined_call_operand.<no memory space> [shape: f32[1], index: 0, kind: input, shape index: {}]   ;;  %s233_s1 = inlined_call_operand.<no memory space> [shape: f32[1], index: 1, kind: input, shape index: {}]   ;;  %s234_s2 = inlined_call_operand.hbm [shape: f32[8,2048], index: 2, kind: input, shape index: {}]   ;;  %s235_s3 = inlined_call_operand.hbm [shape: f32[8,2048], index: 3, kind: output, shape index: {}]  }
   0x1   :  { %11 = vsyncpa [#allocation6], 0  ;;  %s162_s12 = smov [#allocation4]   ;;  %s114_s16 = scalar_lea.hbm %s234_s2, 2048 }
   0x2   :  { %s22_s13 = sshll.u32 %s162_s12, 4  ;;  %p115_p0 = scmp.ne.s32.totalorder %s234_s2, %s114_s16  ;;  %s23_s13 = int_to_ptr.vmem [resolvable:$true] %s22_s13 }
   0x3   :  { %p118_p1 = scmp.lt.u32.totalorder %s114_s16, %s234_s2 }
   0x5   :  { %p120_p2 = pnand %p118_p1, %p115_p0 }
   0x7   :  { %123 = shalt.err (!%p120_p2)
}
   0x8   :  { %s124_s21 = scalar_lea.vmem %s23_s13, 2048  ;;  %p129_p4 = scmp.lt.s32.totalorder %s23_s13, %s23_s13 }
   0x9   :  { %p125_p3 = scmp.ne.s32.totalorder %s23_s13, %s124_s21  ;;  %p130_p5 = scmp.lt.s32.totalorder %s124_s21, %s124_s21 }
   0xb   :  { %p131_p6 = por %p130_p5, %p129_p4 }
   0xd   :  { %p132_p7 = pnand %p131_p6, %p125_p3 }
   0xf   :  { %135 = shalt.err (!%p132_p7)
}
  0x10   :  { %25 = dma.hbm_to_vmem [thread:$0]  %s234_s2, 2048, %s23_s13, [#allocation5]  }
  0x11   :  { %158 = dma.done.wait [#allocation5], 2048  }
  0x12   :  { %159 = vsyncadd [#allocation5], 4294965248  ;;  %v47_v0 = vstv %s232_s0  ;;  %v31_v1 = vld [vmem:[#allocation4] sm:$0xff]  ;;  %v202_v2 = vstv %s233_s1  ;;  %v32_v3 = vld [vmem:[#allocation4 + $0x8] sm:$0xff]  ;;  %s163_s0 = smov [#allocation7]  }
  0x13   :  { %v33_v4 = vld [vmem:[#allocation4 + $0x10] sm:$0xff]  ;;  %v48_v5 = vmul.f32 %v47_v0, %v31_v1  ;;  %v49_v6 = vmul.f32 %v47_v0, %v32_v3  ;;  %v34_v8 = vld [vmem:[#allocation4 + $0x18] sm:$0xff]  ;;  %v35_v9 = vld [vmem:[#allocation4 + $0x20] sm:$0xff]  ;;  %s103_s1 = sshll.u32 %s163_s0, 4  ;;  %s104_s1 = int_to_ptr.vmem [resolvable:$true] %s103_s1 }
  0x14   :  { %v50_v7 = vmul.f32 %v47_v0, %v33_v4  ;;  %v36_v10 = vld [vmem:[#allocation4 + $0x28] sm:$0xff]  ;;  %v51_v11 = vmul.f32 %v47_v0, %v34_v8  ;;  %v52_v12 = vmul.f32 %v47_v0, %v35_v9  ;;  %v37_v14 = vld [vmem:[#allocation4 + $0x30] sm:$0xff]  ;;  %v38_v15 = vld [vmem:[#allocation4 + $0x38] sm:$0xff]  ;;  %s136_s2 = scalar_lea.vmem %s104_s1, 2048  ;;  %p141_p9 = scmp.lt.s32.totalorder %s104_s1, %s104_s1 }
  0x15   :  { %v53_v13 = vmul.f32 %v47_v0, %v36_v10  ;;  %v39_v16 = vld [vmem:[#allocation4 + $0x40] sm:$0xff]  ;;  %v65_v17 = vadd.f32 %v202_v2, %v48_v5  ;;  %v66_v18 = vadd.f32 %v202_v2, %v49_v6  ;;  %v54_v20 = vmul.f32 %v47_v0, %v37_v14  ;;  %v40_v21 = vld [vmem:[#allocation4 + $0x48] sm:$0xff]  ;;  %v41_v22 = vld [vmem:[#allocation4 + $0x50] sm:$0xff]  ;;  %p137_p8 = scmp.ne.s32.totalorder %s104_s1, %s136_s2  ;;  %p142_p10 = scmp.lt.s32.totalorder %s136_s2, %s136_s2 }
  0x16   :  { %v67_v19 = vadd.f32 %v202_v2, %v50_v7  ;;  %v42_v23 = vld [vmem:[#allocation4 + $0x58] sm:$0xff]  ;;  %v68_v24 = vadd.f32 %v202_v2, %v51_v11  ;;  %v69_v25 = vadd.f32 %v202_v2, %v52_v12  ;;  %v55_v27 = vmul.f32 %v47_v0, %v38_v15  ;;  %v43_v28 = vld [vmem:[#allocation4 + $0x60] sm:$0xff]  ;;  %v44_v29 = vld [vmem:[#allocation4 + $0x68] sm:$0xff] }
  0x17   :  { %v70_v26 = vadd.f32 %v202_v2, %v53_v13  ;;  %v45_v30 = vld [vmem:[#allocation4 + $0x70] sm:$0xff]  ;;  %81 = vst [vmem:[#allocation7] sm:$0xff] %v65_v17  ;;  %82 = vst [vmem:[#allocation7 + $0x8] sm:$0xff] %v66_v18  ;;  %v71_v31 = vadd.f32 %v202_v2, %v54_v20  ;;  %v56_v32 = vmul.f32 %v47_v0, %v39_v16  ;;  %v46_v35 = vld [vmem:[#allocation4 + $0x78] sm:$0xff]  ;;  %p143_p11 = por %p142_p10, %p141_p9 }
  0x18   :  { %83 = vst [vmem:[#allocation7 + $0x10] sm:$0xff] %v67_v19  ;;  %v57_v33 = vmul.f32 %v47_v0, %v40_v21  ;;  %v58_v34 = vmul.f32 %v47_v0, %v41_v22  ;;  %84 = vst [vmem:[#allocation7 + $0x18] sm:$0xff] %v68_v24  ;;  %v72_v36 = vadd.f32 %v202_v2, %v55_v27 }
  0x19   :  { %85 = vst [vmem:[#allocation7 + $0x20] sm:$0xff] %v69_v25  ;;  %86 = vst [vmem:[#allocation7 + $0x28] sm:$0xff] %v70_v26  ;;  %v59_v37 = vmul.f32 %v47_v0, %v42_v23  ;;  %v60_v38 = vmul.f32 %v47_v0, %v43_v28  ;;  %v61_v39 = vmul.f32 %v47_v0, %v44_v29  ;;  %p144_p12 = pnand %p143_p11, %p137_p8 }
  0x1a   :  { %87 = vst [vmem:[#allocation7 + $0x30] sm:$0xff] %v71_v31  ;;  %v73_v40 = vadd.f32 %v202_v2, %v56_v32  ;;  %v74_v41 = vadd.f32 %v202_v2, %v57_v33  ;;  %v75_v42 = vadd.f32 %v202_v2, %v58_v34  ;;  %v62_v43 = vmul.f32 %v47_v0, %v45_v30 }
  0x1b   :  { %88 = vst [vmem:[#allocation7 + $0x38] sm:$0xff] %v72_v36  ;;  %v76_v44 = vadd.f32 %v202_v2, %v59_v37  ;;  %v77_v45 = vadd.f32 %v202_v2, %v60_v38  ;;  %v78_v46 = vadd.f32 %v202_v2, %v61_v39  ;;  %v63_v47 = vmul.f32 %v47_v0, %v46_v35 }
  0x1c   :  { %89 = vst [vmem:[#allocation7 + $0x40] sm:$0xff] %v73_v40  ;;  %90 = vst [vmem:[#allocation7 + $0x48] sm:$0xff] %v74_v41  ;;  %v79_v48 = vadd.f32 %v202_v2, %v62_v43 }
  0x1d   :  { %91 = vst [vmem:[#allocation7 + $0x50] sm:$0xff] %v75_v42  ;;  %92 = vst [vmem:[#allocation7 + $0x58] sm:$0xff] %v76_v44  ;;  %v80_v49 = vadd.f32 %v202_v2, %v63_v47 }
  0x1e   :  { %93 = vst [vmem:[#allocation7 + $0x60] sm:$0xff] %v77_v45  ;;  %94 = vst [vmem:[#allocation7 + $0x68] sm:$0xff] %v78_v46 }
  0x1f   :  { %95 = vst [vmem:[#allocation7 + $0x70] sm:$0xff] %v79_v48  ;;  %96 = vst [vmem:[#allocation7 + $0x78] sm:$0xff] %v80_v49 }
  0x20   :  { %147 = shalt.err (!%p144_p12)
}
  0x21   :  { %s148_s30 = scalar_lea.hbm %s235_s3, 2048 }
  0x22   :  { %p149_p13 = scmp.ne.s32.totalorder %s235_s3, %s148_s30  ;;  %p152_p0 = scmp.lt.u32.totalorder %s148_s30, %s235_s3 }
  0x24   :  { %p154_p1 = pnand %p152_p0, %p149_p13 }
  0x26   :  { %157 = shalt.err (!%p154_p1)
}
  0x27   :  { %106 = dma.vmem_to_hbm [thread:$0]  %s104_s1, 2048, %s235_s3, [#allocation6]  }
  0x28   :  { %160 = dma.done.wait [#allocation6], 2048  }
  0x29   :  { %161 = vsyncadd [#allocation6], 4294965248 }
  0x2a   :  { %110 = vsyncpa [#allocation5], 1 }
  0x2b   :  { %111 = vsyncpa [#allocation6], 1 }

</bundles_post_ra>
